<compile_context>
chip_gen: v6e
topology: v6e:2x2x1
jax: 0.10.0
libtpu: 0.0.40
codegen_flags: <defaults>
</compile_context>

<pallas_src>
import jax
import jax.numpy as jnp
import numpy as np
from jax.experimental import pallas as pl
from jax.experimental.pallas import tpu as pltpu


# ---------------------------------------------------------------------------
# Helpers
# ---------------------------------------------------------------------------

def _round_up(x, m):
    return ((x + m - 1) // m) * m


def _vmem_limit_bytes():
    """Per-generation scoped VMEM limit (~85% of physical, capped)."""
    fallback = 48 * 1024 * 1024  # safe on every generation (v7x physical = 64 MiB)
    try:
        info = pltpu.get_tpu_info()
        cap = getattr(info, "vmem_capacity_bytes", None)
        if not cap:
            return fallback
        return int(min(int(cap * 0.85), 110 * 1024 * 1024))
    except Exception:
        return fallback


def _choose_tile(T, target_tm):
    """Pick token tile tm (multiple of 8) and padded token count."""
    tm = min(int(target_tm), max(8, _round_up(T, 8)))
    tm = _round_up(tm, 8)
    t_pad = _round_up(T, tm)
    # v7x has 2 TensorCores: make sure the "parallel" token axis has >= 2
    # tiles whenever possible so the second core does not idle.
    if t_pad // tm < 2 and tm >= 16:
        tm = _round_up(tm // 2, 8)
        t_pad = _round_up(T, tm)
    return tm, t_pad


def _choose_ti(I, cap=512):
    """Intermediate-dim tile (multiple of 128 dividing I, or I itself)."""
    if I <= cap:
        return I
    for cand in range(cap, 127, -128):
        if I % cand == 0:
            return cand
    # TODO(synk): pad ragged intermediate sizes instead of falling back.
    return I


# ---------------------------------------------------------------------------
# Pallas kernels
# ---------------------------------------------------------------------------

def _shared_gate_kernel(x_ref, wgu_ref, wd_ref, wg_ref, shared_ref, logits_ref):
    """Fused shared-expert MLP (SiluAndMul) + router gate matmul.

    x_ref      : [tm, H]   bf16
    wgu_ref    : [H, 2*Is] bf16 (merged gate/up)
    wd_ref     : [Is, H]   bf16
    wg_ref     : [H, E]    bf16 (router gate)
    shared_ref : [tm, H]   bf16 (seed for the MoE accumulator)
    logits_ref : [tm, E]   f32
    """
    x = x_ref[...]
    gu = jnp.dot(x, wgu_ref[...], preferred_element_type=jnp.float32)
    inter = gu.shape[-1] // 2
    gate = gu[:, :inter]
    up = gu[:, inter:]
    act = gate * jax.lax.logistic(gate) * up                      # SiluAndMul (f32)
    shared_ref[...] = jnp.dot(act.astype(jnp.bfloat16), wd_ref[...],
                              preferred_element_type=jnp.float32
                              ).astype(shared_ref.dtype)
    logits_ref[...] = jnp.dot(x, wg_ref[...],
                              preferred_element_type=jnp.float32)


def _gate_only_kernel(x_ref, wg_ref, logits_ref):
    """Router gate only (used when num_shared_experts == 0). Tiled over tokens."""
    logits_ref[...] = jnp.dot(x_ref[...], wg_ref[...],
                              preferred_element_type=jnp.float32)


def _moe_body(na_ref, x_ref, wg_ref, wu_ref, wd_ref, rw_ref, base_ref,
              o_ref, acc_ref):
    """Sparse fused-MoE step.  Grid = (token_tiles, e_grid, i_tiles).

    Scalar prefetch (SMEM):
      na_ref  : [1] int32 number of active experts
    VMEM blocks:
      x_ref    : [tm, H]     bf16
      wg_ref   : [1, H, ti]  bf16 gate-proj columns of active expert ids[e]
      wu_ref   : [1, H, ti]  bf16 up-proj columns
      wd_ref   : [1, ti, H]  bf16 down-proj rows
      rw_ref   : [1, tm, 1]  f32  routing weights for expert ids[e] (0 if unrouted)
      base_ref : [tm, H]     bf16 shared-expert output (or None)
      o_ref    : [tm, H]     bf16 output (written once, at the last step)
      acc_ref  : [tm, H]     f32  VMEM scratch accumulator
    """
    e = pl.program_id(1)
    i = pl.program_id(2)
    n_e = pl.num_programs(1)
    n_i = pl.num_programs(2)

    @pl.when(jnp.logical_and(e == 0, i == 0))
    def _init():
        if base_ref is None:
            acc_ref[...] = jnp.zeros_like(acc_ref)
        else:
            acc_ref[...] = base_ref[...].astype(jnp.float32)   # fuse shared add

    @pl.when(e < na_ref[0])                      # skip inactive / padded experts
    def _compute():
        x = x_ref[...]
        g = jnp.dot(x, wg_ref[0], preferred_element_type=jnp.float32)
        u = jnp.dot(x, wu_ref[0], preferred_element_type=jnp.float32)
        act = g * jax.lax.logistic(g) * u                      # [tm, ti] f32
        w = rw_ref[0]                                          # [tm, 1]  f32
        acc_ref[...] += jnp.dot((act * w).astype(jnp.bfloat16), wd_ref[0],
                                preferred_element_type=jnp.float32)

    @pl.when(jnp.logical_and(e == n_e - 1, i == n_i - 1))
    def _finalize():
        o_ref[...] = acc_ref[...].astype(o_ref.dtype)


def _moe_kernel_with_base(ids_ref, na_ref, x_ref, wg_ref, wu_ref, wd_ref,
                          rw_ref, base_ref, o_ref, acc_ref):
    del ids_ref  # only used inside index_maps
    _moe_body(na_ref, x_ref, wg_ref, wu_ref, wd_ref, rw_ref, base_ref,
              o_ref, acc_ref)


def _moe_kernel_no_base(ids_ref, na_ref, x_ref, wg_ref, wu_ref, wd_ref,
                        rw_ref, o_ref, acc_ref):
    del ids_ref
    _moe_body(na_ref, x_ref, wg_ref, wu_ref, wd_ref, rw_ref, None,
              o_ref, acc_ref)


# ---------------------------------------------------------------------------
# pallas_call wrappers
# ---------------------------------------------------------------------------

def shared_mlp_and_gate(x_pad, w_gate_up, w_down, w_gate, *, tm, vmem_limit):
    t_pad, H = x_pad.shape
    E = w_gate.shape[1]
    two_is = w_gate_up.shape[1]
    i_s = two_is // 2
    # TODO(synk): tile Is / use pl.Buffered(1) on the constant weight blocks
    #   for production sizes on v7x (64 MiB VMEM).
    return pl.pallas_call(
        _shared_gate_kernel,
        out_shape=(jax.ShapeDtypeStruct((t_pad, H), jnp.bfloat16),
                   jax.ShapeDtypeStruct((t_pad, E), jnp.float32)),
        grid=(t_pad // tm,),
        in_specs=[
            pl.BlockSpec((tm, H), lambda t: (t, 0)),
            pl.BlockSpec((H, two_is), lambda t: (0, 0)),
            pl.BlockSpec((i_s, H), lambda t: (0, 0)),
            pl.BlockSpec((H, E), lambda t: (0, 0)),
        ],
        out_specs=(pl.BlockSpec((tm, H), lambda t: (t, 0)),
                   pl.BlockSpec((tm, E), lambda t: (t, 0))),
        compiler_params=pltpu.CompilerParams(
            dimension_semantics=("parallel",),
            vmem_limit_bytes=vmem_limit),
    )(x_pad, w_gate_up, w_down, w_gate)


def gate_only(x_pad, w_gate, *, tm, vmem_limit):
    t_pad, H = x_pad.shape
    E = w_gate.shape[1]
    return pl.pallas_call(
        _gate_only_kernel,
        out_shape=jax.ShapeDtypeStruct((t_pad, E), jnp.float32),
        grid=(t_pad // tm,),
        in_specs=[pl.BlockSpec((tm, H), lambda t: (t, 0)),
                  pl.BlockSpec((H, E), lambda t: (0, 0))],
        out_specs=pl.BlockSpec((tm, E), lambda t: (t, 0)),
        compiler_params=pltpu.CompilerParams(
            dimension_semantics=("parallel",),
            vmem_limit_bytes=vmem_limit),
    )(x_pad, w_gate)


def fused_moe(x_pad, w_gate_e, w_up_e, w_down_e, rwT, base, active_ids,
              num_active, *, tm, e_grid, vmem_limit):
    t_pad, H = x_pad.shape
    E, _, I = w_gate_e.shape
    ti = _choose_ti(I)
    n_i = I // ti
    has_base = base is not None

    # For padded expert steps (e >= num_active) keep the weight block index
    # pinned at i=0 so no extra weight DMAs are issued (compute is skipped).
    def safe_i(e, i, na_ref):
        return i * (e < na_ref[0]).astype(jnp.int32)

    in_specs = [
        pl.BlockSpec((tm, H), lambda t, e, i, ids, na: (t, 0)),
        pl.BlockSpec((1, H, ti),
                     lambda t, e, i, ids, na: (ids[e], 0, safe_i(e, i, na))),
        pl.BlockSpec((1, H, ti),
                     lambda t, e, i, ids, na: (ids[e], 0, safe_i(e, i, na))),
        pl.BlockSpec((1, ti, H),
                     lambda t, e, i, ids, na: (ids[e], safe_i(e, i, na), 0)),
        pl.BlockSpec((1, tm, 1), lambda t, e, i, ids, na: (ids[e], t, 0)),
    ]
    args = [active_ids, num_active, x_pad, w_gate_e, w_up_e, w_down_e, rwT]
    if has_base:
        in_specs.append(pl.BlockSpec((tm, H), lambda t, e, i, ids, na: (t, 0)))
        args.append(base)
        kernel = _moe_kernel_with_base
    else:
        kernel = _moe_kernel_no_base

    return pl.pallas_call(
        kernel,
        out_shape=jax.ShapeDtypeStruct((t_pad, H), jnp.bfloat16),
        grid_spec=pltpu.PrefetchScalarGridSpec(
            num_scalar_prefetch=2,
            grid=(t_pad // tm, e_grid, n_i),
            in_specs=in_specs,
            out_specs=pl.BlockSpec((tm, H), lambda t, e, i, ids, na: (t, 0)),
            scratch_shapes=[pltpu.VMEM((tm, H), jnp.float32)],
        ),
        compiler_params=pltpu.CompilerParams(
            dimension_semantics=("parallel", "arbitrary", "arbitrary"),
            vmem_limit_bytes=vmem_limit),
    )(*args)


# ---------------------------------------------------------------------------
# Full forward
# ---------------------------------------------------------------------------

def bailing_moe_forward(hidden_states, params, top_k, norm_topk_prob=True,
                        num_shared_experts=1, target_tm=None):
    """Full BailingMoE forward (tp_size == 1)."""
    T, H = hidden_states.shape
    E = params["gate_w"].shape[1]
    I_moe = params["expert_w_down"].shape[1]

    vmem_limit = _vmem_limit_bytes()
    if target_tm is None:
        # Larger token tiles where VMEM allows (v5e/v6e: 128 MiB; v7x: 64 MiB).
        target_tm = 512 if vmem_limit > 80 * 1024 * 1024 else 256
    tm, t_pad = _choose_tile(T, target_tm)

    x = hidden_states.astype(jnp.bfloat16)
    if t_pad != T:
        x = jnp.pad(x, ((0, t_pad - T), (0, 0)))

    gate_w = params["gate_w"].astype(jnp.bfloat16)

    # --- shared experts (BailingMLP) fused with the router gate ---
    if num_shared_experts > 0:
        base, router_logits = shared_mlp_and_gate(
            x,
            params["shared_w_gate_up"].astype(jnp.bfloat16),
            params["shared_w_down"].astype(jnp.bfloat16),
            gate_w, tm=tm, vmem_limit=vmem_limit)
    else:
        base = None
        router_logits = gate_only(x, gate_w, tm=tm, vmem_limit=vmem_limit)

    # --- FusedMoE routing glue (softmax -> topk -> renormalize) ---
    logits = router_logits[:T]
    probs = jax.nn.softmax(logits, axis=-1)
    topk_w, topk_ids = jax.lax.top_k(probs, top_k)
    if norm_topk_prob:
        topk_w = topk_w / (jnp.sum(topk_w, axis=-1, keepdims=True) + 1e-20)

    # expert-major routing weights [E, T_pad, 1]: block selected via index_map,
    # no in-kernel dynamic lane slicing; padded token rows are zero.
    dense_w = jnp.zeros((T, E), jnp.float32).at[
        jnp.arange(T)[:, None], topk_ids].set(topk_w)
    rwT = jnp.zeros((E, t_pad, 1), jnp.float32).at[:, :T, 0].set(dense_w.T)

    # compacted active-expert list for scalar prefetch
    hit = jnp.zeros((E,), jnp.int32).at[topk_ids.reshape(-1)].add(1)
    is_active = hit > 0
    num_active = jnp.sum(is_active.astype(jnp.int32))
    perm = jnp.argsort(jnp.where(is_active, 0, 1),
                       stable=True).astype(jnp.int32)
    last_active = perm[jnp.maximum(num_active - 1, 0)]
    active_ids = jnp.where(jnp.arange(E, dtype=jnp.int32) < num_active,
                           perm, last_active)
    num_active_arr = num_active.reshape(1).astype(jnp.int32)

    # static cap on the expert grid axis: at most T*top_k experts can be active
    e_grid = max(1, min(E, T * top_k))

    # split merged gate/up so the intermediate dim can be tiled
    # TODO(synk): pre-split at weight-load time in a real deployment.
    wgu = params["expert_w_gate_up"].astype(jnp.bfloat16)
    w_gate_e = wgu[:, :, :I_moe]
    w_up_e = wgu[:, :, I_moe:]
    w_down_e = params["expert_w_down"].astype(jnp.bfloat16)

    out = fused_moe(x, w_gate_e, w_up_e, w_down_e, rwT, base, active_ids,
                    num_active_arr, tm=tm, e_grid=e_grid,
                    vmem_limit=vmem_limit)

    # TODO(synk): tensor_model_parallel_all_reduce is a no-op here (tp_size == 1).
    return out[:T]


# ---------------------------------------------------------------------------
# Pure-JAX reference (same mixed precision as the kernels)
# ---------------------------------------------------------------------------

def _silu(v):
    return v * jax.lax.logistic(v)


def reference_forward(hidden_states, params, top_k, norm_topk_prob,
                      num_shared_experts):
    T, H = hidden_states.shape
    xb = hidden_states.astype(jnp.bfloat16)
    gate_w = params["gate_w"].astype(jnp.bfloat16)

    if num_shared_experts > 0:
        wgu = params["shared_w_gate_up"].astype(jnp.bfloat16)
        wd = params["shared_w_down"].astype(jnp.bfloat16)
        gu = jnp.dot(xb, wgu, preferred_element_type=jnp.float32)
        i_s = gu.shape[-1] // 2
        act = _silu(gu[:, :i_s]) * gu[:, i_s:]
        base = jnp.dot(act.astype(jnp.bfloat16), wd,
                       preferred_element_type=jnp.float32).astype(jnp.bfloat16)
        out = base.astype(jnp.float32)
    else:
        out = jnp.zeros((T, H), jnp.float32)

    logits = jnp.dot(xb, gate_w, preferred_element_type=jnp.float32)
    probs = jax.nn.softmax(logits, axis=-1)
    topk_w, topk_ids = jax.lax.top_k(probs, top_k)
    if norm_topk_prob:
        topk_w = topk_w / (jnp.sum(topk_w, axis=-1, keepdims=True) + 1e-20)
    E = logits.shape[-1]
    dense_w = jnp.zeros((T, E), jnp.float32).at[
        jnp.arange(T)[:, None], topk_ids].set(topk_w)

    for e in range(E):
        wgu_e = params["expert_w_gate_up"][e].astype(jnp.bfloat16)
        wd_e = params["expert_w_down"][e].astype(jnp.bfloat16)
        gu = jnp.dot(xb, wgu_e, preferred_element_type=jnp.float32)
        i_m = gu.shape[-1] // 2
        act = _silu(gu[:, :i_m]) * gu[:, i_m:]
        out = out + jnp.dot((dense_w[:, e:e + 1] * act).astype(jnp.bfloat16),
                            wd_e, preferred_element_type=jnp.float32)
    return out.astype(jnp.bfloat16)


# ---------------------------------------------------------------------------
# Main
# ---------------------------------------------------------------------------

if __name__ == "__main__":
    # Small, TPU-tile-friendly config mirroring the module's shapes.
    hidden_size = 256
    num_experts = 16
    top_k = 2
    moe_intermediate_size = 128
    num_shared_experts = 1
    norm_topk_prob = True
    shared_intermediate = moe_intermediate_size * num_shared_experts

    key = jax.random.PRNGKey(0)
    keys = jax.random.split(key, 6)
    scale = 0.02

    params = {
        # gate: ReplicatedLinear(hidden, num_experts), stored [H, E]
        "gate_w": scale * jax.random.normal(
            keys[0], (hidden_size, num_experts), jnp.float32),
        # shared BailingMLP: merged gate_up [H, 2*Is], down [Is, H]
        "shared_w_gate_up": scale * jax.random.normal(
            keys[1], (hidden_size, 2 * shared_intermediate), jnp.float32),
        "shared_w_down": scale * jax.random.normal(
            keys[2], (shared_intermediate, hidden_size), jnp.float32),
        # FusedMoE expert weights: [E, H, 2*I_moe] and [E, I_moe, H]
        "expert_w_gate_up": scale * jax.random.normal(
            keys[3], (num_experts, hidden_size, 2 * moe_intermediate_size),
            jnp.float32),
        "expert_w_down": scale * jax.random.normal(
            keys[4], (num_experts, moe_intermediate_size, hidden_size),
            jnp.float32),
    }

    # --- prefill-like check (shared expert enabled, exercises token padding) --
    num_tokens = 24
    hidden_states = jax.random.normal(
        keys[5], (num_tokens, hidden_size), jnp.float32)

    out = bailing_moe_forward(hidden_states, params, top_k,
                              norm_topk_prob=norm_topk_prob,
                              num_shared_experts=num_shared_experts)
    out = jax.block_until_ready(out)
    ref = reference_forward(hidden_states, params, top_k, norm_topk_prob,
                            num_shared_experts)
    np.testing.assert_allclose(np.asarray(out, dtype=np.float32),
                               np.asarray(ref, dtype=np.float32),
                               rtol=2e-2, atol=2e-3)

    # --- decode-like check (no shared expert, exercises capped expert grid) --
    hidden_states_dec = hidden_states[:4]
    out2 = bailing_moe_forward(hidden_states_dec, params, top_k,
                               norm_topk_prob=norm_topk_prob,
                               num_shared_experts=0)
    out2 = jax.block_until_ready(out2)
    ref2 = reference_forward(hidden_states_dec, params, top_k,
                             norm_topk_prob, 0)
    np.testing.assert_allclose(np.asarray(out2, dtype=np.float32),
                               np.asarray(ref2, dtype=np.float32),
                               rtol=2e-2, atol=2e-3)

    print("KERNEL_OK")
</pallas_src>

<mosaic_0001>
module attributes {stable_mosaic.version = 11 : i64} {
  func.func @_shared_gate_kernel(%arg0: i32, %arg1: memref<16x256xbf16, #tpu.memory_space<vmem>>, %arg2: memref<256x256xbf16, #tpu.memory_space<vmem>>, %arg3: memref<128x256xbf16, #tpu.memory_space<vmem>>, %arg4: memref<256x16xbf16, #tpu.memory_space<vmem>>, %arg5: memref<16x256xbf16, #tpu.memory_space<vmem>>, %arg6: memref<16x16xf32, #tpu.memory_space<vmem>>) attributes {dimension_semantics = [#tpu.dimension_semantics<parallel>], iteration_bounds = array<i64: 2>, scalar_prefetch = 0 : i64, scratch_operands = 0 : i64, tpu.core_type = #tpu.core_type<tc>, window_params = [{transform_indices = @transform_0, window_bounds = array<i64: 16, 256>}, {pipeline_mode = #tpu.pipeline_mode<synchronous>, transform_indices = @transform_1, window_bounds = array<i64: 256, 256>}, {pipeline_mode = #tpu.pipeline_mode<synchronous>, transform_indices = @transform_2, window_bounds = array<i64: 128, 256>}, {pipeline_mode = #tpu.pipeline_mode<synchronous>, transform_indices = @transform_3, window_bounds = array<i64: 256, 16>}, {transform_indices = @transform_4, window_bounds = array<i64: 16, 256>}, {transform_indices = @transform_5, window_bounds = array<i64: 16, 16>}]} {
    %c0 = arith.constant 0 : index
    %c0_0 = arith.constant 0 : index
    %0 = vector.load %arg1[%c0, %c0_0] : memref<16x256xbf16, #tpu.memory_space<vmem>>, vector<16x256xbf16>
    %c0_1 = arith.constant 0 : index
    %c0_2 = arith.constant 0 : index
    %1 = vector.load %arg2[%c0_1, %c0_2] : memref<256x256xbf16, #tpu.memory_space<vmem>>, vector<256x256xbf16>
    %cst = arith.constant dense<0.000000e+00> : vector<16x256xf32>
    %2 = tpu.matmul %0, %1, %cst {dimension_numbers = #tpu.dot_dimension_numbers<[1], [0], [0], [1], [0, 0, 1, 1], [], []>} : vector<16x256xbf16>, vector<256x256xbf16>, vector<16x256xf32> -> vector<16x256xf32>
    %3 = vector.extract_strided_slice %2 {offsets = [0, 0], sizes = [16, 128], strides = [1, 1]} : vector<16x256xf32> to vector<16x128xf32>
    %4 = vector.extract_strided_slice %2 {offsets = [0, 128], sizes = [16, 128], strides = [1, 1]} : vector<16x256xf32> to vector<16x128xf32>
    %5 = arith.negf %3 : vector<16x128xf32>
    %6 = math.exp %5 : vector<16x128xf32>
    %cst_3 = arith.constant 1.000000e+00 : f32
    %7 = vector.broadcast %cst_3 : f32 to vector<16x128xf32>
    %8 = arith.addf %7, %6 : vector<16x128xf32>
    %9 = arith.divf %7, %8 : vector<16x128xf32>
    %10 = arith.mulf %3, %9 : vector<16x128xf32>
    %11 = arith.mulf %10, %4 : vector<16x128xf32>
    %12 = arith.truncf %11 : vector<16x128xf32> to vector<16x128xbf16>
    %c0_4 = arith.constant 0 : index
    %c0_5 = arith.constant 0 : index
    %13 = vector.load %arg3[%c0_4, %c0_5] : memref<128x256xbf16, #tpu.memory_space<vmem>>, vector<128x256xbf16>
    %cst_6 = arith.constant dense<0.000000e+00> : vector<16x256xf32>
    %14 = tpu.matmul %12, %13, %cst_6 {dimension_numbers = #tpu.dot_dimension_numbers<[1], [0], [0], [1], [0, 0, 1, 1], [], []>} : vector<16x128xbf16>, vector<128x256xbf16>, vector<16x256xf32> -> vector<16x256xf32>
    %15 = arith.truncf %14 : vector<16x256xf32> to vector<16x256xbf16>
    %c0_7 = arith.constant 0 : index
    %c0_8 = arith.constant 0 : index
    %16 = vector.load %arg5[%c0_7, %c0_8] : memref<16x256xbf16, #tpu.memory_space<vmem>>, vector<16x256xbf16>
    tpu.vector_store %arg5[%c0_7, %c0_8], %15 {strides = array<i32>} : memref<16x256xbf16, #tpu.memory_space<vmem>>, vector<16x256xbf16>,
    %c0_9 = arith.constant 0 : index
    %c0_10 = arith.constant 0 : index
    %17 = vector.load %arg4[%c0_9, %c0_10] : memref<256x16xbf16, #tpu.memory_space<vmem>>, vector<256x16xbf16>
    %cst_11 = arith.constant dense<0.000000e+00> : vector<16x16xf32>
    %18 = tpu.matmul %0, %17, %cst_11 {dimension_numbers = #tpu.dot_dimension_numbers<[1], [0], [0], [1], [0, 0, 1, 1], [], []>} : vector<16x256xbf16>, vector<256x16xbf16>, vector<16x16xf32> -> vector<16x16xf32>
    %c0_12 = arith.constant 0 : index
    %c0_13 = arith.constant 0 : index
    %19 = vector.load %arg6[%c0_12, %c0_13] : memref<16x16xf32, #tpu.memory_space<vmem>>, vector<16x16xf32>
    tpu.vector_store %arg6[%c0_12, %c0_13], %18 {strides = array<i32>} : memref<16x16xf32, #tpu.memory_space<vmem>>, vector<16x16xf32>,
    return
  }
  func.func @transform_0(%arg0: i32) -> (i32, i32) {
    %c0_i32 = arith.constant 0 : i32
    %c0_i32_0 = arith.constant 0 : i32
    return %arg0, %c0_i32 : i32, i32
  }
  func.func @transform_1(%arg0: i32) -> (i32, i32) {
    %c0_i32 = arith.constant 0 : i32
    %c0_i32_0 = arith.constant 0 : i32
    %c0_i32_1 = arith.constant 0 : i32
    return %c0_i32, %c0_i32_0 : i32, i32
  }
  func.func @transform_2(%arg0: i32) -> (i32, i32) {
    %c0_i32 = arith.constant 0 : i32
    %c0_i32_0 = arith.constant 0 : i32
    %c0_i32_1 = arith.constant 0 : i32
    return %c0_i32, %c0_i32_0 : i32, i32
  }
  func.func @transform_3(%arg0: i32) -> (i32, i32) {
    %c0_i32 = arith.constant 0 : i32
    %c0_i32_0 = arith.constant 0 : i32
    %c0_i32_1 = arith.constant 0 : i32
    return %c0_i32, %c0_i32_0 : i32, i32
  }
  func.func @transform_4(%arg0: i32) -> (i32, i32) {
    %c0_i32 = arith.constant 0 : i32
    %c0_i32_0 = arith.constant 0 : i32
    return %arg0, %c0_i32 : i32, i32
  }
  func.func @transform_5(%arg0: i32) -> (i32, i32) {
    %c0_i32 = arith.constant 0 : i32
    %c0_i32_0 = arith.constant 0 : i32
    return %arg0, %c0_i32 : i32, i32
  }
}

</mosaic_0001>

<bundles_post_ra>
// kernel: tpu_custom_call.1
= control target key start
LH: loop header
LB: loop body
LE: loop exit
PB: predicated region body
PF: predicated region fallthrough
CT: control target
= control target key end

     0   :  { %11 = vsyncpa [#allocation3], 0  ;;  %s1737_s0 = inlined_call_operand.hbm [shape: bf16[32,256], index: 0, kind: input, shape index: {}]   ;;  %s1738_s1 = inlined_call_operand.hbm [shape: bf16[256,256], index: 1, kind: input, shape index: {}]   ;;  %s1739_s2 = inlined_call_operand.vmem [shape: bf16[128,256], index: 2, kind: input, shape index: {}]   ;;  %s1740_s3 = inlined_call_operand.vmem [shape: bf16[256,16], index: 3, kind: input, shape index: {}]   ;;  %s1741_s4 = inlined_call_operand.hbm [shape: bf16[32,256], index: 4, kind: output, shape index: {0}]   ;;  %s1742_s5 = inlined_call_operand.vmem [shape: f32[32,16], index: 5, kind: output, shape index: {1}]  }
   0x1   :  { %13 = vsyncpa [#allocation3 + $0x1], 0 }
   0x2   :  { %14 = vsyncpa [#allocation6], 0 }
   0x3   :  { %15 = vsyncpa [#allocation4], 0 }
   0x4   :  { %17 = vsyncpa [#allocation4 + $0x1], 0  ;;  %s1438_s18 = smov 0   ;;  %s1440_s19 = smov 0  }
   0x5   :  { %s1442_s20 = smov 0   ;;  %s1444_s21 = smov 0  }
   0x6 LB: > { %s1459_s22 = sadd.s32 4294967295, %s1398_s21   ;;  %s997_s23 = sadd.s32 4294967294, %s1398_s21   ;;  %s1398_s21 = sphi %s1444_s21, %s1766_s21   ;;  %s1394_s20 = sphi %s1442_s20, %s1765_s20   ;;  %s1390_s19 = sphi %s1440_s19, %s1764_s19   ;;  %s1386_s18 = sphi %s1438_s18, %s1763_s18  }
   0x7   : > { %p43_p0 = scmp.ne.s32.totalorder %s1390_s19, %s1386_s18  ;;  %p1743_p1 = scmp.eq.s32.totalorder %s1459_s22, 0 }
   0x8   : > { %p136_p3 = scmp.eq.s32.totalorder %s997_s23, 1  ;;  %p998_p5 = scmp.ge.s32.totalorder %s1398_s21, 1 }
   0x9   : > { %p1468_p4 = por %p1743_p1, %p43_p0  ;;  %p169_p7 = scmp.lt.s32.totalorder %s1398_s21, 3 }
   0xa   : > { %p1473_p6 = por %p136_p3, %p43_p0  ;;  %s1400_s27 = smov [#allocation5]  }
   0xb   : > { %s1748_s24 = scalar_select %p1468_p4, 1, 0 }
   0xc   : > { %s1749_s25 = scalar_select %p1473_p6, 1, 0 }
   0xd   : > { %p1478_p8 = pnand %p998_p5, %p169_p7  ;;  %s181_s28 = sshll.u32 %s1400_s27, 4  ;;  %s182_s28 = int_to_ptr.vmem [resolvable:$true] %s181_s28 }
   0xe   : > { %s1492_s30 = sadd.s32 1, %s1398_s21   ;;  %s30_s6 = sadd.s32 1, %s1394_s20 }
   0xf   : > { %s1750_s26 = scalar_select %p1478_p8, 1, 0 }
  0x10   : > { %p1123_p9 = pneg %p1478_p8  ;;  %s27_s7 = ssub.s32 %s1398_s21, %s1492_s30 }
  0x11   : > { %s1287_s8 = scalar_lea.vmem %s182_s28, 4096  ;;  %p1295_p5 = scmp.lt.s32.totalorder %s182_s28, %s182_s28 }
  0x12   : > { %p1487_p11 = pnand %p1123_p9, %p1743_p1  ;;  %p1288_p13 = scmp.ne.s32.totalorder %s182_s28, %s1287_s8 }
  0x13   : > { %p1296_p7 = scmp.lt.s32.totalorder %s1287_s8, %s1287_s8 }
  0x14   : > { %p1278_p12 = pneg %p1487_p11 }
  0x15   : > { %p1297_p10 = por %p1296_p7, %p1295_p5 }
  0x16   : > { %p1290_p0 = pnand %p1288_p13, %p1278_p12 }
  0x18   : > { %p1291_p3 = pneg %p1290_p0 }
  0x1a   : > { %p1298_p2 = pnand %p1297_p10, %p1291_p3 }
  0x1c   : > { %1301 = shalt.err (!%p1298_p2)
}
  0x1d   : > { %s1744_s9 = smov 128   ;;  %s1402_s10 = smov 8  }
  0x1e   : > { %1126 = dma.hbm_to_vmem [thread:$0]  (!%p1487_p11), %s1738_s1, 4096, %s182_s28, [#allocation6], %s1744_s9, %s1744_s9, %s1402_s10  }
  0x1f   : > { %p28_p2 = scmp.eq.s32.totalorder %s27_s7, 0  ;;  %p37_p9 = scmp.ne.s32.totalorder %s1394_s20, %s1390_s19 }
  0x20   : > { %p38_p10 = scmp.eq.s32.totalorder %s1398_s21, 0  ;;  %p1136_p12 = scmp.lt.s32.totalorder %s1398_s21, 2 }
  0x21   : > { %s1512_s13 = scalar_select %p28_p2, %s1394_s20, %s30_s6  }
  0x22   : > { %p39_p13 = por %p38_p10, %p37_p9  ;;  %p1752_p0 = scmp.eq.s32.totalorder %s1459_s22, 1 }
  0x23   : > { %s201_s15 = sand.u32 1, %s1394_s20   ;;  %s1088_s16 = sshll.u32 %s1398_s21, 8 }
  0x24   : > { %p1516_p3 = por %p1752_p0, %p37_p9  ;;  %s1001_s17 = sshll.u32 %s201_s15, 4 }
  0x25   : > { %s1525_s29 = scalar_lea.hbm %s1737_s0, %s1088_s16  ;;  %s205_s28 = scalar_lea.vmem [#allocation2], %s1001_s17 }
  0x26   : > { %s1753_s14 = scalar_select %p1516_p3, 1, 0 }
  0x27   : > { %s213_s6 = sshll.u32 %s205_s28, 4  ;;  %p1527_p11 = pnand %p1136_p12, %p39_p13  ;;  %s1531_s6 = int_to_ptr.vmem [resolvable:$true] %s213_s6 }
  0x28   : > { %s1533_s8 = scalar_lea.sflag [#allocation3], %s201_s15  ;;  %s1302_s11 = scalar_lea.hbm %s1525_s29, 256 }
  0x29   : > { %p1303_p5 = scmp.ne.s32.totalorder %s1525_s29, %s1302_s11  ;;  %p1304_p7 = pneg %p1527_p11 }
  0x2a   : > { %s1307_s17 = scalar_lea.hbm %s1737_s0, 512  ;;  %p1308_p10 = scmp.lt.s32.totalorder %s1525_s29, %s1737_s0 }
  0x2b   : > { %p1305_p2 = pnand %p1304_p7, %p1303_p5  ;;  %p1309_p12 = scmp.lt.s32.totalorder %s1307_s17, %s1302_s11 }
  0x2d   : > { %p1306_p9 = pneg %p1305_p2  ;;  %p1310_p13 = por %p1309_p12, %p1308_p10 }
  0x2f   : > { %p1311_p0 = pnand %p1310_p13, %p1306_p9 }
  0x31   : > { %1314 = shalt.err (!%p1311_p0)
}
  0x32   : > { %s1315_s15 = scalar_lea.vmem %s1531_s6, 256  ;;  %s1403_s28 = smov [#allocation2]  }
  0x33   : > { %p1316_p1 = scmp.ne.s32.totalorder %s1531_s6, %s1315_s15  ;;  %s1320_s9 = sshll.u32 %s1403_s28, 4  ;;  %s1321_s9 = int_to_ptr.vmem [resolvable:$false] %s1320_s9 }
  0x34   : > { %s1322_s12 = scalar_lea.vmem %s1321_s9, 512  ;;  %p1323_p2 = scmp.lt.s32.totalorder %s1531_s6, %s1321_s9 }
  0x35   : > { %p1318_p6 = pnand %p1316_p1, %p1304_p7  ;;  %p1324_p3 = scmp.lt.s32.totalorder %s1322_s12, %s1315_s15 }
  0x37   : > { %p1319_p5 = pneg %p1318_p6  ;;  %p1325_p4 = por %p1324_p3, %p1323_p2 }
  0x39   : > { %p1326_p8 = pnand %p1325_p4, %p1319_p5 }
  0x3b   : > { %1329 = shalt.err (!%p1326_p8)
}
  0x3c   : > { %s1755_s11 = smov 128   ;;  %p1756_p1 = scmp.ne.s32.totalorder %s1750_s26, 0 }
  0x3d   : > { %1130 = dma.hbm_to_vmem [thread:$0]  (!%p1527_p11), %s1525_s29, 256, %s1531_s6, %s1533_s8, %s1755_s11, %s1755_s11, %s1402_s10  }
  0x3e   : > { %225 = sbr.rel (%p1756_p1) target bundleno = 605 (0x25d), region = 36  ;;  %s1560_s16 = sand.u32 (!%p1756_p1), 1, %s1390_s19  }
  0x3f   : > { %s1006_s9 = sshll.u32 (!%p1756_p1), %s1560_s16, 4  ;;  %s228_s17 = scalar_lea.sflag (!%p1756_p1), [#allocation3], %s1560_s16 }
  0x40   : > { %s1566_s7 = scalar_lea.vmem (!%p1756_p1), [#allocation2], %s1006_s9  ;;  %p1757_p4 = scmp.ne.s32.totalorder (!%p1756_p1), %s1748_s24, 0 }
  0x43   : > { %1373 = dma.done.wait (%p1757_p4), %s228_s17, 256  }
  0x44   : > { %1375 = vsyncadd (%p1757_p4), %s228_s17, 4294967040  ;;  %p1758_p6 = scmp.eq.s32.totalorder %s1459_s22, 0 }
  0x46   : > { %1377 = dma.done.wait (%p1758_p6), [#allocation6], 4096   ;;  %p1759_p8 = pmov %p1758_p6 }
  0x47   : > { %v1177_v0 = vld [vmem:[#allocation5 + $0x74] ss:$8 sps:$4 sm:$0xff]   ;;  %v1179_v1 = vld [vmem:[#allocation5 + $0x70] ss:$8 sps:$4 sm:$0xff]   ;;  %v1180_v2 = vld [vmem:[#allocation5 + $0x64] ss:$8 sps:$4 sm:$0xff]  }
  0x48   : > { %1379 = vsyncadd (%p1759_p8), [#allocation6], 4294963200  ;;  %480 = vmatprep.subr.bf16.mxu0 %v1177_v0  ;;  %v1182_v3 = vld [vmem:[#allocation5 + $0x60] ss:$8 sps:$4 sm:$0xff]   ;;  %v1183_v4 = vld [vmem:[#allocation5 + $0x54] ss:$8 sps:$4 sm:$0xff]  }
  0x49   : > { %481 = vmatpush1.bf16.msra.mxu0 %v1179_v1  ;;  %v1185_v5 = vld [vmem:[#allocation5 + $0x50] ss:$8 sps:$4 sm:$0xff]   ;;  %v1186_v6 = vld [vmem:[#allocation5 + $0x44] ss:$8 sps:$4 sm:$0xff]   ;;  %v1188_v7 = vld [vmem:[#allocation5 + $0x40] ss:$8 sps:$4 sm:$0xff]  }
  0x4a   : > { %482 = vmatprep.subr.bf16.mxu0 %v1180_v2  ;;  %v1189_v8 = vld [vmem:[#allocation5 + $0x34] ss:$8 sps:$4 sm:$0xff]   ;;  %v1191_v9 = vld [vmem:[#allocation5 + $0x30] ss:$8 sps:$4 sm:$0xff]   ;;  %v1192_v10 = vld [vmem:[#allocation5 + $0x24] ss:$8 sps:$4 sm:$0xff]  }
  0x4b   : > { %v1194_v11 = vld [vmem:[#allocation5 + $0x20] ss:$8 sps:$4 sm:$0xff]   ;;  %v1195_v12 = vld [vmem:[#allocation5 + $0x14] ss:$8 sps:$4 sm:$0xff]   ;;  %v1197_v13 = vld [vmem:[#allocation5 + $0x10] ss:$8 sps:$4 sm:$0xff]  }
  0x4c   : > { %v1198_v14 = vld [vmem:[#allocation5 + $0x4] ss:$8 sps:$4 sm:$0xff]   ;;  %v1200_v16 = vld [vmem:[#allocation5] ss:$8 sps:$4 sm:$0xff]   ;;  %v1201_v17 = vld [vmem:[#allocation5 + $0xf4] ss:$8 sps:$4 sm:$0xff]  }
  0x4d   : > { %483 = vmatpush1.bf16.msra.mxu0 %v1182_v3  ;;  %v1577_v15 = vld [vmem:[%s1566_s7 + $0x4] ss:$8 sps:$4 sm:$0xff]   ;;  %v1203_v18 = vld [vmem:[#allocation5 + $0xf0] ss:$8 sps:$4 sm:$0xff]   ;;  %v1206_v20 = vld [vmem:[#allocation5 + $0xe0] ss:$8 sps:$4 sm:$0xff]  }
  0x4e   : > { %484 = vmatprep.subr.bf16.mxu0 %v1183_v4  ;;  %512 = vmatprep.mubr.bf16.mxu0 %v1577_v15  ;;  %v1204_v19 = vld [vmem:[#allocation5 + $0xe4] ss:$8 sps:$4 sm:$0xff]   ;;  %v1207_v21 = vld [vmem:[#allocation5 + $0xd4] ss:$8 sps:$4 sm:$0xff]   ;;  %v1209_v22 = vld [vmem:[#allocation5 + $0xd0] ss:$8 sps:$4 sm:$0xff]  }
  0x4f   : > { %v1210_v23 = vld [vmem:[#allocation5 + $0xc4] ss:$8 sps:$4 sm:$0xff]   ;;  %v1212_v24 = vld [vmem:[#allocation5 + $0xc0] ss:$8 sps:$4 sm:$0xff]   ;;  %v1213_v25 = vld [vmem:[#allocation5 + $0xb4] ss:$8 sps:$4 sm:$0xff]  }
  0x50   : > { %v1215_v26 = vld [vmem:[#allocation5 + $0xb0] ss:$8 sps:$4 sm:$0xff]   ;;  %v1216_v27 = vld [vmem:[#allocation5 + $0xa4] ss:$8 sps:$4 sm:$0xff]   ;;  %v1218_v28 = vld [vmem:[#allocation5 + $0xa0] ss:$8 sps:$4 sm:$0xff]  }
  0x51   : > { %485 = vmatpush1.bf16.msra.mxu0 %v1185_v5  ;;  %v1219_v29 = vld [vmem:[#allocation5 + $0x94] ss:$8 sps:$4 sm:$0xff]   ;;  %v1221_v30 = vld [vmem:[#allocation5 + $0x90] ss:$8 sps:$4 sm:$0xff]   ;;  %v1222_v31 = vld [vmem:[#allocation5 + $0x84] ss:$8 sps:$4 sm:$0xff]  }
  0x52   : > { %486 = vmatprep.subr.bf16.mxu0 %v1186_v6  ;;  %v1224_v32 = vld [vmem:[#allocation5 + $0x80] ss:$8 sps:$4 sm:$0xff]   ;;  %v1228_v34 = vld [vmem:[%s1739_s2 + $0x74] ss:$8 sps:$4 sm:$0xff]   ;;  %v1230_v35 = vld [vmem:[%s1739_s2 + $0x70] ss:$8 sps:$4 sm:$0xff]  }
  0x53   : > { %v1581_v33 = vld [vmem:[%s1566_s7] ss:$8 sps:$4 sm:$0xff]   ;;  %636 = vmatprep.subr.bf16.mxu1 %v1228_v34  ;;  %v1231_v36 = vld [vmem:[%s1739_s2 + $0x64] ss:$8 sps:$4 sm:$0xff]   ;;  %v1234_v38 = vld [vmem:[%s1739_s2 + $0x54] ss:$8 sps:$4 sm:$0xff]  }
  0x54   : > { %637 = vmatpush1.bf16.msra.mxu1 %v1230_v35  ;;  %v1233_v37 = vld [vmem:[%s1739_s2 + $0x60] ss:$8 sps:$4 sm:$0xff]   ;;  %v1236_v39 = vld [vmem:[%s1739_s2 + $0x50] ss:$8 sps:$4 sm:$0xff]   ;;  %v1237_v40 = vld [vmem:[%s1739_s2 + $0x44] ss:$8 sps:$4 sm:$0xff]  }
  0x55   : > { %487 = vmatpush1.bf16.msra.mxu0 %v1188_v7  ;;  %638 = vmatprep.subr.bf16.mxu1 %v1231_v36  ;;  %v1239_v41 = vld [vmem:[%s1739_s2 + $0x40] ss:$8 sps:$4 sm:$0xff]   ;;  %v1240_v42 = vld [vmem:[%s1739_s2 + $0x34] ss:$8 sps:$4 sm:$0xff]   ;;  %v1242_v43 = vld [vmem:[%s1739_s2 + $0x30] ss:$8 sps:$4 sm:$0xff]  }
  0x56   : > { %488 = vmatprep.subr.bf16.mxu0 %v1189_v8  ;;  %v1243_v44 = vld [vmem:[%s1739_s2 + $0x24] ss:$8 sps:$4 sm:$0xff]   ;;  %v1245_v45 = vld [vmem:[%s1739_s2 + $0x20] ss:$8 sps:$4 sm:$0xff]   ;;  %v1246_v46 = vld [vmem:[%s1739_s2 + $0x14] ss:$8 sps:$4 sm:$0xff]  }
  0x57   : > { %v1248_v47 = vld [vmem:[%s1739_s2 + $0x10] ss:$8 sps:$4 sm:$0xff]   ;;  %v1249_v48 = vld [vmem:[%s1739_s2 + $0x4] ss:$8 sps:$4 sm:$0xff]   ;;  %v1251_v49 = vld [vmem:[%s1739_s2] ss:$8 sps:$4 sm:$0xff]  }
  0x58   : > { %639 = vmatpush1.bf16.msra.mxu1 %v1233_v37  ;;  %v1252_v50 = vld [vmem:[%s1740_s3 + $0x78] sm:$0xff]   ;;  %v1404_v51 = vmov 0   ;;  %v1254_v6 = vld [vmem:[%s1740_s3 + $0x70] sm:$0xff]   ;;  %v1256_v8 = vld [vmem:[%s1740_s3 + $0x68] sm:$0xff]   ;;  %s259_s15 = scalar_lea.vmem [#allocation7], %s1006_s9  ;;  %s1092_s12 = sshll.u32 %s1459_s22, 8 }
  0x59   : > { %489 = vmatpush1.bf16.msra.mxu0 %v1191_v9  ;;  %640 = vmatprep.subr.bf16.mxu1 %v1234_v38  ;;  %v1253_v4 = vld [vmem:[%s1740_s3 + $0x38] sm:$0xff]   ;;  %v1255_v7 = vld [vmem:[%s1740_s3 + $0x30] sm:$0xff]   ;;  %v1257_v9 = vld [vmem:[%s1740_s3 + $0x28] sm:$0xff]   ;;  %s885_s28 = sshll.u32 %s259_s15, 4  ;;  %s1690_s7 = scalar_lea.hbm %s1741_s4, %s1092_s12  ;;  %s1685_s28 = int_to_ptr.vmem [resolvable:$true] %s885_s28 }
  0x5a   : > { %490 = vmatprep.subr.bf16.mxu0 %v1192_v10  ;;  %668 = vmatprep.mubr.bf16.mxu1 %v1404_v51  ;;  %v1258_v10 = vld [vmem:[%s1740_s3 + $0x60] sm:$0xff]   ;;  %s866_s24 = scalar_lea.sflag [#allocation4], %s1560_s16  ;;  %s1330_s9 = scalar_lea.vmem %s1685_s28, 256 }
  0x5b   : > { %p1331_p3 = scmp.ne.s32.totalorder %s1685_s28, %s1330_s9  ;;  %p1760_p11 = scmp.ne.s32.totalorder %s1753_s14, 0 }
  0x5c   : > { %641 = vmatpush1.bf16.msra.mxu1 %v1236_v39  ;;  %s1405_s26 = smov [#allocation7]  }
  0x5d   : > { %491 = vmatpush1.bf16.msra.mxu0 %v1194_v11  ;;  %642 = vmatprep.subr.bf16.mxu1 %v1237_v40  ;;  %v1259_v11 = vld [vmem:[%s1740_s3 + $0x20] sm:$0xff]   ;;  %p1332_p7 = pnand %p1331_p3, %p1760_p11  ;;  %s1334_s10 = sshll.u32 %s1405_s26, 4  ;;  %s1335_s10 = int_to_ptr.vmem [resolvable:$false] %s1334_s10 }
  0x5e   : > { %492 = vmatprep.subr.bf16.mxu0 %v1195_v12  ;;  %v1260_v12 = vld [vmem:[%s1740_s3 + $0x58] sm:$0xff]   ;;  %s1336_s29 = scalar_lea.vmem %s1335_s10, 512  ;;  %p1337_p10 = scmp.lt.s32.totalorder %s1685_s28, %s1335_s10 }
  0x5f   : > { %p1333_p9 = pneg %p1332_p7  ;;  %p1338_p12 = scmp.lt.s32.totalorder %s1336_s29, %s1330_s9 }
  0x60   : > { %643 = vmatpush1.bf16.msra.mxu1 %v1239_v41 }
  0x61   : > { %493 = vmatpush1.bf16.msra.mxu0 %v1197_v13  ;;  %644 = vmatprep.subr.bf16.mxu1 %v1240_v42  ;;  %v1261_v13 = vld [vmem:[%s1740_s3 + $0x18] sm:$0xff]   ;;  %p1339_p13 = por %p1338_p12, %p1337_p10 }
  0x62   : > { %494 = vmatprep.subr.bf16.mxu0 %v1198_v14  ;;  %v1262_v14 = vld [vmem:[%s1740_s3 + $0x50] sm:$0xff]  }
  0x63   : > { %p1340_p0 = pnand %p1339_p13, %p1333_p9 }
  0x64   : > { %645 = vmatpush1.bf16.msra.mxu1 %v1242_v43 }
  0x65   : > { %495 = vmatpush1.bf16.msra.mxu0 %v1200_v16  ;;  %646 = vmatprep.subr.bf16.mxu1 %v1243_v44  ;;  %v1264_v16 = vld [vmem:[%s1740_s3 + $0x48] sm:$0xff]  }
  0x66   : > { %496 = vmatprep.subr.bf16.mxu0 %v1201_v17  ;;  %v1265_v17 = vld [vmem:[%s1740_s3 + $0x8] sm:$0xff]  }
  0x68   : > { %647 = vmatpush1.bf16.msra.mxu1 %v1245_v45 }
  0x69   : > { %497 = vmatpush2.bf16.msra.mxu0 %v1203_v18  ;;  %648 = vmatprep.subr.bf16.mxu1 %v1246_v46  ;;  %v1266_v18 = vld [vmem:[%s1740_s3 + $0x40] sm:$0xff]  }
  0x6a   : > { %498 = vmatprep.subr.bf16.mxu0 %v1204_v19  ;;  %v1267_v19 = vld [vmem:[%s1740_s3] sm:$0xff]  }
  0x6c   : > { %649 = vmatpush1.bf16.msra.mxu1 %v1248_v47 }
  0x6d   : > { %499 = vmatpush2.bf16.msra.mxu0 %v1206_v20  ;;  %650 = vmatprep.subr.bf16.mxu1 %v1249_v48 }
  0x6e   : > { %500 = vmatprep.subr.bf16.mxu0 %v1207_v21 }
  0x70   : > { %651 = vmatpush1.bf16.msra.mxu1 %v1251_v49 }
  0x71   : > { %501 = vmatpush2.bf16.msra.mxu0 %v1209_v22  ;;  %1093 = vmatprep.subr.bf16.mxu1 %v1252_v50 }
  0x72   : > { %502 = vmatprep.subr.bf16.mxu0 %v1210_v23 }
  0x75   : > { %503 = vmatpush2.bf16.msra.mxu0 %v1212_v24 }
  0x76   : > { %504 = vmatprep.subr.bf16.mxu0 %v1213_v25 }
  0x79   : > { %505 = vmatpush2.bf16.msra.mxu0 %v1215_v26 }
  0x7a   : > { %506 = vmatprep.subr.bf16.mxu0 %v1216_v27 }
  0x7d   : > { %507 = vmatpush2.bf16.msra.mxu0 %v1218_v28 }
  0x7e   : > { %508 = vmatprep.subr.bf16.mxu0 %v1219_v29 }
  0x81   : > { %509 = vmatpush2.bf16.msra.mxu0 %v1221_v30 }
  0x82   : > { %510 = vmatprep.subr.bf16.mxu0 %v1222_v31 }
  0x85   : > { %511 = vmatpush2.bf16.msra.mxu0 %v1224_v32 }
  0x88   : > { %513 = vmatmul.mubr.bf16.vlgmr.msra.gmra.mxu0 %v1581_v33 }
 0x148   : > { %v514_v52 = vpop.f32.mrf.mxu0 }
 0x149   : > { %v1045_v53 = vmul.f32 -1.442695, %v514_v52 }
 0x14a   : > { %v516_v54 = vpop.f32.mrf.mxu0 }
 0x14b   : > { %1268 = vpow2.f32 %v1045_v53 }
 0x14c   : > { %v518_v55 = vpop.f32.mrf.mxu0 }
 0x14d   : > { %v1046_v56 = vmul.f32 -1.442695, %v518_v55 }
 0x14e   : > { %v520_v1 = vpop.f32.mrf.mxu0 }
 0x14f   : > { %1270 = vpow2.f32 %v1046_v56 }
 0x158   : > { %v1269_v57 = vpop.eup %1268 }
 0x159   : > { %v529_v58 = vadd.f32 1.0, %v1269_v57 }
 0x15b   : > { %1272 = vrcp.f32 %v529_v58 }
 0x15c   : > { %v1271_v59 = vpop.eup %1270 }
 0x15d   : > { %v530_v60 = vadd.f32 1.0, %v1271_v59 }
 0x15f   : > { %1274 = vrcp.f32 %v530_v60 }
 0x168   : > { %v1273_v61 = vpop.eup %1272 }
 0x169   : > { %v535_v62 = vmul.f32 %v1273_v61, %v514_v52 }
 0x16b   : > { %v537_v2 = vmul.f32 %v535_v62, %v516_v54 }
 0x16c   : > { %v1275_v63 = vpop.eup %1274 }
 0x16d   : > { %v536_v0 = vmul.f32 %v1275_v63, %v518_v55 }
 0x16f   : > { %v538_v3 = vmul.f32 %v536_v0, %v520_v1 }
 0x171   : > { %v539_v5 = vpack.c.bf16 %v538_v3, %v537_v2 }
 0x173   : > { %669 = vmatmul.mubr.bf16.vlgmr.msra.gmra.mxu1 %v539_v5 }
 0x174   : > { %1094 = vmatpush3.bf16.msra.mxu1 %v1253_v4  ;;  %853 = vmatprep.mubr.bf16.mxu1 %v1577_v15  ;;  %v1263_v15 = vld [vmem:[%s1740_s3 + $0x10] sm:$0xff]  }
 0x175   : > { %1095 = vmatprep.subr.bf16.mxu1 %v1254_v6 }
 0x178   : > { %1096 = vmatpush3.bf16.msra.mxu1 %v1255_v7 }
 0x179   : > { %1097 = vmatprep.subr.bf16.mxu1 %v1256_v8 }
 0x17c   : > { %1098 = vmatpush3.bf16.msra.mxu1 %v1257_v9 }
 0x17d   : > { %1099 = vmatprep.subr.bf16.mxu1 %v1258_v10 }
 0x180   : > { %1100 = vmatpush3.bf16.msra.mxu1 %v1259_v11 }
 0x181   : > { %1101 = vmatprep.subr.bf16.mxu1 %v1260_v12 }
 0x184   : > { %1102 = vmatpush3.bf16.msra.mxu1 %v1261_v13 }
 0x185   : > { %1103 = vmatprep.subr.bf16.mxu1 %v1262_v14 }
 0x188   : > { %1104 = vmatpush3.bf16.msra.mxu1 %v1263_v15 }
 0x189   : > { %1105 = vmatprep.subr.bf16.mxu1 %v1264_v16 }
 0x18c   : > { %1106 = vmatpush3.bf16.msra.mxu1 %v1265_v17 }
 0x18d   : > { %1107 = vmatprep.subr.bf16.mxu1 %v1266_v18 }
 0x190   : > { %1108 = vmatpush3.bf16.msra.mxu1 %v1267_v19 }
 0x193   : > { %854 = vmatmul.mubr.bf16.vlgmr.msra.gmra.mxu1 %v1581_v33 }
 0x233   : > { %v670_v20 = vpop.f32.mrf.mxu1 }
 0x235   : > { %v672_v21 = vpop.f32.mrf.mxu1 }
 0x236   : > { %v1089_v22 = vpack.c.bf16 %v672_v21, %v670_v20 }
 0x237   : > { %v674_v23 = vpop.f32.mrf.mxu1 }
 0x238   : > { %691 = vst [vmem:[%s259_s15] sm:$0xff] %v1089_v22 }
 0x239   : > { %v676_v24 = vpop.f32.mrf.mxu1 }
 0x23a   : > { %v1090_v25 = vpack.c.bf16 %v676_v24, %v674_v23 }
 0x23c   : > { %692 = vst [vmem:[%s259_s15 + $0x8] sm:$0xff] %v1090_v25 }
 0x23d   : > { %1343 = shalt.err (!%p1340_p0)
}
 0x23e   : > { %s1344_s6 = scalar_lea.hbm %s1690_s7, 256  ;;  %s1348_s27 = scalar_lea.hbm %s1741_s4, 512 }
 0x23f   : > { %p1345_p5 = scmp.ne.s32.totalorder %s1690_s7, %s1344_s6  ;;  %p1349_p4 = scmp.lt.s32.totalorder %s1690_s7, %s1741_s4 }
 0x240   : > { %p1350_p6 = scmp.lt.s32.totalorder %s1348_s27, %s1344_s6 }
 0x241   : > { %p1346_p2 = pnand %p1345_p5, %p1760_p11 }
 0x242   : > { %p1351_p8 = por %p1350_p6, %p1349_p4 }
 0x243   : > { %p1347_p1 = pneg %p1346_p2 }
 0x245   : > { %p1352_p3 = pnand %p1351_p8, %p1347_p1 }
 0x247   : > { %1355 = shalt.err (!%p1352_p3)
}
 0x248   : > { %s1406_s11 = smov 128   ;;  %s1407_s17 = smov 8   ;;  %vm862_vm0 = vcmask 130048  }
 0x249   : > { %1121 = dma.vmem_to_hbm [thread:$0]  (%p1760_p11), %s1685_s28, 256, %s1690_s7, %s866_s24, %s1406_s11, %s1406_s11, %s1407_s17  }
 0x24a   : > { %s1009_s9 = sshll.u32 %s1459_s22, 1 }
 0x24b   : > { %p270_p7 = scmp.lt.s32.totalorder %s1009_s9, 3 }
 0x24d   : > { %s1768_s9 = smov (!%p270_p7, %s1009_s9), 3 }
 0x24e   : > { %s1010_s26 = sshll.u32 %s1768_s9, 3 }
 0x24f   : > { %s273_s6 = scalar_lea.vmem %s1742_s5, %s1010_s26 }
 0x253   : > { %v1109_v26 = vpop.f32.mrf.mxu1 }
 0x255   : > { %v1110_v27 = vpop.f32.mrf.mxu1 }
 0x256   : > { %v1111_v28 = vadd.f32 %v1110_v27, %v1109_v26 }
 0x257   : > { %v1112_v29 = vpop.f32.mrf.mxu1 }
 0x258   : > { %863 = vst.msk [vmem:[%s273_s6] sm:$0xff] %vm862_vm0, %v1111_v28 }
 0x259   : > { %v1113_v30 = vpop.f32.mrf.mxu1 }
 0x25a   : > { %v1114_v31 = vadd.f32 %v1113_v30, %v1112_v29 }
 0x25c   : > { %864 = vst.msk [vmem:[%s273_s6 + $0x8] sm:$0xff] %vm862_vm0, %v1114_v31 }
 0x25d PF: > { %s904_s22 = sand.u32 1, %s1386_s18   ;;  %p1761_p11 = scmp.ne.s32.totalorder %s1749_s25, 0 }
 0x25e   : > { %p1762_p9 = scmp.ge.s32.totalorder %s1398_s21, 2  ;;  %s905_s14 = scalar_lea.sflag [#allocation4], %s904_s22 }
 0x260   : > { %p1132_p10 = pnand %p1762_p9, %p1761_p11 }
 0x262   : > { %p1133_p12 = pneg %p1132_p10 }
 0x264   : > { %1381 = dma.done.wait (%p1133_p12), %s905_s14, 256  }
 0x265   : > { %1383 = vsyncadd (%p1133_p12), %s905_s14, 4294967040  ;;  %p20_p13 = scmp.ge.s32.totalorder %s1492_s30, 4   ;;  %s1763_s18 = smov %s1390_s19 }
 0x266   : > { %s1764_s19 = smov %s1394_s20  ;;  %s1765_s20 = smov %s1512_s13 }
 0x267   : > { %s1766_s21 = smov %s1492_s30  ;;  %22 = sbr.rel (!%p20_p13) target bundleno = 6 (0x6), region = 97 }
 0x26c   :  { %918 = vsyncpa [#allocation3], 1 }
 0x26d   :  { %920 = vsyncpa [#allocation3 + $0x1], 1 }
 0x26e   :  { %921 = vsyncpa [#allocation6], 1 }
 0x26f   :  { %922 = vsyncpa [#allocation4], 1 }
 0x270   :  { %924 = vsyncpa [#allocation4 + $0x1], 1 }

</bundles_post_ra>
